<compile_context>
chip_gen: v6e
topology: v6e:2x2x1
jax: 0.10.0
libtpu: 0.0.40
codegen_flags: <defaults>
</compile_context>

<pallas_src>
import jax
import jax.numpy as jnp
import numpy as np
from jax.experimental import pallas as pl
from jax.experimental.pallas import tpu as pltpu


# ----------------------------------------------------------------------------
# Kernels
# ----------------------------------------------------------------------------

def proj_kernel(x_ref, w_ref, o_ref):
    """o = (x @ w) cast to bf16 -- one-shot feature projection per row tile."""
    o_ref[...] = jnp.dot(x_ref[...], w_ref[...],
                         preferred_element_type=jnp.float32).astype(o_ref.dtype)


def a_prop_bias_kernel(a_ref, r_ref, b_ref, o_ref):
    """o = A_hat @ r + b.

    Grid = (row tiles, A-column reduction tiles).  The output block's index_map
    is k-invariant, so it stays VMEM-resident across the reduction and is used
    directly as the f32 accumulator (no scratch).
    """
    k = pl.program_id(1)

    @pl.when(k == 0)
    def _():
        o_ref[...] = jnp.zeros_like(o_ref)

    o_ref[...] += jnp.dot(a_ref[...], r_ref[...],
                          preferred_element_type=jnp.float32)

    @pl.when(k == pl.num_programs(1) - 1)
    def _():
        o_ref[...] += b_ref[...]


def a_prop_heads_kernel(a_ref, r_ref, bcat_ref, noise_ref, z_ref, acc_ref):
    """Fused mean/log_std heads + reparameterization.

    cat = A_hat @ (h @ [Wm|Ws]) + [bm|bs]      (accumulated in (tm, 2*h2) scratch)
    z   = cat[:, :h2] + noise * exp(cat[:, h2:])
    """
    k = pl.program_id(1)
    h2 = noise_ref.shape[-1]

    @pl.when(k == 0)
    def _():
        acc_ref[...] = jnp.zeros_like(acc_ref)

    acc_ref[...] += jnp.dot(a_ref[...], r_ref[...],
                            preferred_element_type=jnp.float32)

    @pl.when(k == pl.num_programs(1) - 1)
    def _():
        cat = acc_ref[...] + bcat_ref[...]
        mean = cat[:, :h2]
        log_std = cat[:, h2:]
        z_ref[...] = mean + noise_ref[...] * jnp.exp(log_std)


def decoder_kernel(zr_ref, zt_ref, out_ref):
    """adj[i, j] = nan_to_num(sigmoid(z_i . z_j)) over one lane-dense tile."""
    logits = jnp.dot(zr_ref[...], zt_ref[...],
                     preferred_element_type=jnp.float32)
    # sigmoid via exp (EUP) + approx reciprocal (EUP vrcp) -> divide off the VALU.
    adj = pl.reciprocal(1.0 + jnp.exp(-logits), approx=True)
    # sigmoid output is bounded in [0, 1]; only NaN (from NaN logits) needs cleanup.
    out_ref[...] = jnp.where(jnp.isnan(adj), jnp.float32(0.0), adj)


# ----------------------------------------------------------------------------
# Wrapper
# ----------------------------------------------------------------------------

def _round_up(x, m):
    return (x + m - 1) // m * m


def vgae_forward(a_hat, features, w1, b1, wm, bm, ws, bs, noise,
                 *, tm=256, tk=2048, dec_tm=256, dec_tn=1024, proj_rt=512):
    """Full VGAE forward; returns the reconstructed (N, N) adjacency (f32).

    Defaults target v5e/v6e/v7x: bf16 A block (tm, tk) = 1 MiB (2 MiB double
    buffered); decoder f32 output tile (dec_tm, dec_tn) = 1 MiB (2 MiB double
    buffered) -- all comfortably under the 32 MiB default scoped VMEM, v7x
    included.  Tiles are clamped (powers of two >= 128) for small graphs.
    """
    n, in_dim = features.shape
    h1 = w1.shape[1]
    h2 = wm.shape[1]
    f32 = jnp.float32
    bf16 = jnp.bfloat16

    # Clamp tile sizes for small graphs.  All tiles are powers of two >= 128 so
    # the largest one determines the padding and every tile divides it.
    n_p2 = max(128, int(pl.next_power_of_2(n)))
    tm = max(128, min(tm, n_p2))
    tk = max(128, min(tk, n_p2))
    dec_tm = max(128, min(dec_tm, n_p2))
    dec_tn = max(128, min(dec_tn, n_p2))
    proj_rt = max(128, min(proj_rt, n_p2))
    np_ = _round_up(n, max(tm, tk, dec_tm, dec_tn, proj_rt))

    # Pad along the node dimension (padded A rows/cols are zero -> padded rows
    # never contaminate the first n rows/cols; see module docstring).  A in bf16
    # halves its HBM/VMEM traffic and feeds the MXU at its native bf16 rate.
    a_pad = jnp.zeros((np_, np_), f32).at[:n, :n].set(a_hat).astype(bf16)
    x_pad = jnp.zeros((np_, in_dim), f32).at[:n, :].set(features)
    noise_pad = jnp.zeros((np_, h2), f32).at[:n, :].set(noise)

    # Fused mean | log_std head weights: one A pass serves both heads.
    wcat = jnp.concatenate([wm, ws], axis=1)     # (h1, 2*h2)
    bcat = jnp.concatenate([bm, bs], axis=1)     # (1, 2*h2)

    gm = np_ // tm          # row tiles for A propagation
    gk = np_ // tk          # reduction tiles
    gp = np_ // proj_rt     # row tiles for projections

    parallel_arbitrary = pltpu.CompilerParams(
        dimension_semantics=("parallel", "arbitrary"))

    # ---- projection 1: XW = (X @ W1) in bf16 ---------------------------------
    xw = pl.pallas_call(
        proj_kernel,
        out_shape=jax.ShapeDtypeStruct((np_, h1), bf16),
        grid=(gp,),
        in_specs=[
            pl.BlockSpec((proj_rt, in_dim), lambda i: (i, 0)),
            pl.BlockSpec((in_dim, h1), lambda i: (0, 0)),
        ],
        out_specs=pl.BlockSpec((proj_rt, h1), lambda i: (i, 0)),
        compiler_params=pltpu.CompilerParams(dimension_semantics=("parallel",)),
    )(x_pad, w1)

    # ---- stage 1: h = A_hat @ XW + b1 -----------------------------------------
    h = pl.pallas_call(
        a_prop_bias_kernel,
        out_shape=jax.ShapeDtypeStruct((np_, h1), f32),
        grid=(gm, gk),
        in_specs=[
            pl.BlockSpec((tm, tk), lambda i, k: (i, k)),      # A tile (bf16)
            pl.BlockSpec((tk, h1), lambda i, k: (k, 0)),      # XW reduction slice (bf16)
            pl.BlockSpec((1, h1), lambda i, k: (0, 0)),       # b1
        ],
        out_specs=pl.BlockSpec((tm, h1), lambda i, k: (i, 0)),  # k-invariant accumulator
        compiler_params=parallel_arbitrary,
        cost_estimate=pl.CostEstimate(
            flops=2 * np_ * np_ * h1,
            transcendentals=0,
            bytes_accessed=2 * np_ * np_ + 2 * np_ * h1 + 4 * np_ * h1),
    )(a_pad, xw, b1)

    # ---- projection 2: HW = (h @ [Wm|Ws]) in bf16 -----------------------------
    hw = pl.pallas_call(
        proj_kernel,
        out_shape=jax.ShapeDtypeStruct((np_, 2 * h2), bf16),
        grid=(gp,),
        in_specs=[
            pl.BlockSpec((proj_rt, h1), lambda i: (i, 0)),
            pl.BlockSpec((h1, 2 * h2), lambda i: (0, 0)),
        ],
        out_specs=pl.BlockSpec((proj_rt, 2 * h2), lambda i: (i, 0)),
        compiler_params=pltpu.CompilerParams(dimension_semantics=("parallel",)),
    )(h, wcat)

    # ---- stage 2: fused heads + reparameterization -> z -----------------------
    z = pl.pallas_call(
        a_prop_heads_kernel,
        out_shape=jax.ShapeDtypeStruct((np_, h2), f32),
        grid=(gm, gk),
        in_specs=[
            pl.BlockSpec((tm, tk), lambda i, k: (i, k)),        # A tile (bf16)
            pl.BlockSpec((tk, 2 * h2), lambda i, k: (k, 0)),    # HW reduction slice (bf16)
            pl.BlockSpec((1, 2 * h2), lambda i, k: (0, 0)),     # [bm|bs]
            pl.BlockSpec((tm, h2), lambda i, k: (i, 0)),        # noise row tile
        ],
        out_specs=pl.BlockSpec((tm, h2), lambda i, k: (i, 0)),
        scratch_shapes=[pltpu.VMEM((tm, 2 * h2), f32)],
        compiler_params=parallel_arbitrary,
        cost_estimate=pl.CostEstimate(
            flops=2 * np_ * np_ * (2 * h2),
            transcendentals=np_ * h2,
            bytes_accessed=2 * np_ * np_ + 2 * np_ * 2 * h2 + 4 * np_ * 2 * h2),
    )(a_pad, hw, bcat, noise_pad)

    # ---- decoder: adj = nan_to_num(sigmoid(z @ z.T)) ---------------------------
    # Feed a pre-transposed z.T so the decoder contraction is a plain row-major
    # matmul (no per-tile lane transpose of the 8-wide contraction axis).
    zt = z.T                                          # (h2, np_), tiny copy
    adj = pl.pallas_call(
        decoder_kernel,
        out_shape=jax.ShapeDtypeStruct((np_, np_), f32),
        grid=(np_ // dec_tm, np_ // dec_tn),
        in_specs=[
            pl.BlockSpec((dec_tm, h2), lambda i, j: (i, 0)),    # z row tile
            pl.BlockSpec((h2, dec_tn), lambda i, j: (0, j)),    # z.T col tile
        ],
        out_specs=pl.BlockSpec((dec_tm, dec_tn), lambda i, j: (i, j)),  # lane-dense
        compiler_params=pltpu.CompilerParams(
            dimension_semantics=("parallel", "parallel")),
        cost_estimate=pl.CostEstimate(
            flops=2 * np_ * np_ * h2,
            transcendentals=2 * np_ * np_,
            bytes_accessed=4 * np_ * np_ + 8 * np_ * h2),
    )(z, zt)

    return adj[:n, :n]


# ----------------------------------------------------------------------------
# Graph / parameter construction helpers
# ----------------------------------------------------------------------------

def build_normalized_adj(edge_index, num_nodes):
    """Dense GCN propagation matrix: D^{-1/2} (A + I) D^{-1/2}."""
    src, dst = edge_index
    a = jnp.zeros((num_nodes, num_nodes), jnp.float32)
    a = a.at[dst, src].add(1.0)
    a = a + jnp.eye(num_nodes, dtype=jnp.float32)      # add_self_loops
    deg = a.sum(axis=1)
    dinv = jnp.where(deg > 0, 1.0 / jnp.sqrt(deg), 0.0)
    return dinv[:, None] * a * dinv[None, :]


def glorot(key, shape):
    fan_in, fan_out = shape
    limit = np.sqrt(6.0 / (fan_in + fan_out))
    return jax.random.uniform(key, shape, jnp.float32, -limit, limit)


if __name__ == "__main__":
    # Small, deterministic problem.
    num_nodes = 16
    in_dim = 8
    hidden1 = 16
    hidden2 = 8

    key = jax.random.PRNGKey(0)
    k_feat, k_w1, k_wm, k_ws, k_noise = jax.random.split(key, 5)

    features = jax.random.normal(k_feat, (num_nodes, in_dim), jnp.float32)

    # Simple symmetric ring graph as edge_index (2, E).
    s = np.arange(num_nodes)
    src = np.concatenate([s, (s + 1) % num_nodes])
    dst = np.concatenate([(s + 1) % num_nodes, s])
    edge_index = jnp.asarray(np.stack([src, dst]), jnp.int32)

    a_hat = build_normalized_adj(edge_index, num_nodes)

    # GCNConv params: glorot weights, zero biases (2-D for lane broadcast).
    w1 = glorot(k_w1, (in_dim, hidden1))
    b1 = jnp.zeros((1, hidden1), jnp.float32)
    wm = glorot(k_wm, (hidden1, hidden2))
    bm = jnp.zeros((1, hidden2), jnp.float32)
    ws = glorot(k_ws, (hidden1, hidden2))
    bs = jnp.zeros((1, hidden2), jnp.float32)

    # Reparameterization noise (torch.randn equivalent), deterministic here.
    noise = jax.random.normal(k_noise, (num_nodes, hidden2), jnp.float32)

    # TODO(synk): decoder_mlp from __init__ is never used in forward(); not implemented.

    adj_rec = vgae_forward(a_hat, features, w1, b1, wm, bm, ws, bs, noise)
    adj_rec = jax.block_until_ready(adj_rec)

    # Pure-JAX reference with the same bf16 quantization of the A-matmul operands.
    a_q = a_hat.astype(jnp.bfloat16).astype(jnp.float32)
    xw_q = (features @ w1).astype(jnp.bfloat16).astype(jnp.float32)
    h_ref = a_q @ xw_q + b1
    wcat = jnp.concatenate([wm, ws], axis=1)
    bcat = jnp.concatenate([bm, bs], axis=1)
    hw_q = (h_ref @ wcat).astype(jnp.bfloat16).astype(jnp.float32)
    cat_ref = a_q @ hw_q + bcat
    mean_ref, log_std_ref = cat_ref[:, :hidden2], cat_ref[:, hidden2:]
    z_ref = mean_ref + noise * jnp.exp(log_std_ref)
    adj_ref = jnp.nan_to_num(jax.nn.sigmoid(z_ref @ z_ref.T), nan=0.0)

    np.testing.assert_allclose(np.asarray(adj_rec), np.asarray(adj_ref),
                               rtol=3e-3, atol=3e-3)

    print("KERNEL_OK")
</pallas_src>

<mosaic_0001>
module attributes {stable_mosaic.version = 11 : i64} {
  func.func @proj_kernel(%arg0: i32, %arg1: memref<128x8xf32, #tpu.memory_space<vmem>>, %arg2: memref<8x16xf32, #tpu.memory_space<vmem>>, %arg3: memref<128x16xbf16, #tpu.memory_space<vmem>>) attributes {dimension_semantics = [#tpu.dimension_semantics<parallel>], iteration_bounds = array<i64: 1>, scalar_prefetch = 0 : i64, scratch_operands = 0 : i64, tpu.core_type = #tpu.core_type<tc>, window_params = [{transform_indices = @transform_0, window_bounds = array<i64: 128, 8>}, {pipeline_mode = #tpu.pipeline_mode<synchronous>, transform_indices = @transform_1, window_bounds = array<i64: 8, 16>}, {transform_indices = @transform_2, window_bounds = array<i64: 128, 16>}]} {
    %c0 = arith.constant 0 : index
    %c0_0 = arith.constant 0 : index
    %0 = vector.load %arg1[%c0, %c0_0] : memref<128x8xf32, #tpu.memory_space<vmem>>, vector<128x8xf32>
    %c0_1 = arith.constant 0 : index
    %c0_2 = arith.constant 0 : index
    %1 = vector.load %arg2[%c0_1, %c0_2] : memref<8x16xf32, #tpu.memory_space<vmem>>, vector<8x16xf32>
    %cst = arith.constant dense<0.000000e+00> : vector<128x16xf32>
    %2 = tpu.matmul %0, %1, %cst {dimension_numbers = #tpu.dot_dimension_numbers<[1], [0], [0], [1], [0, 0, 1, 1], [], []>} : vector<128x8xf32>, vector<8x16xf32>, vector<128x16xf32> -> vector<128x16xf32>
    %3 = arith.truncf %2 : vector<128x16xf32> to vector<128x16xbf16>
    %c0_3 = arith.constant 0 : index
    %c0_4 = arith.constant 0 : index
    %4 = vector.load %arg3[%c0_3, %c0_4] : memref<128x16xbf16, #tpu.memory_space<vmem>>, vector<128x16xbf16>
    tpu.vector_store %arg3[%c0_3, %c0_4], %3 {strides = array<i32>} : memref<128x16xbf16, #tpu.memory_space<vmem>>, vector<128x16xbf16>,
    return
  }
  func.func @transform_0(%arg0: i32) -> (i32, i32) {
    %c0_i32 = arith.constant 0 : i32
    %c0_i32_0 = arith.constant 0 : i32
    return %arg0, %c0_i32 : i32, i32
  }
  func.func @transform_1(%arg0: i32) -> (i32, i32) {
    %c0_i32 = arith.constant 0 : i32
    %c0_i32_0 = arith.constant 0 : i32
    %c0_i32_1 = arith.constant 0 : i32
    return %c0_i32, %c0_i32_0 : i32, i32
  }
  func.func @transform_2(%arg0: i32) -> (i32, i32) {
    %c0_i32 = arith.constant 0 : i32
    %c0_i32_0 = arith.constant 0 : i32
    return %arg0, %c0_i32 : i32, i32
  }
}

</mosaic_0001>

<bundles_post_ra>
// kernel: tpu_custom_call.1
= control target key start
LH: loop header
LB: loop body
LE: loop exit
PB: predicated region body
PF: predicated region fallthrough
CT: control target
= control target key end

     0   :  { %vm28_vm0 = vcmask 64512   ;;  %vm286_vm1 = vcmask 125952   ;;  %s546_s1 = inlined_call_operand.vmem [shape: f32[8,16], index: 1, kind: input, shape index: {}]   ;;  %s547_s0 = inlined_call_operand.vmem [shape: f32[128,8], index: 0, kind: input, shape index: {}]   ;;  %s548_s2 = inlined_call_operand.vmem [shape: bf16[128,16], index: 2, kind: output, shape index: {}]  }
   0x1   :  { %v27_v0 = vld [vmem:[%s546_s1] sm:$0xff]  ;;  %v12_v3 = vld [vmem:[%s547_s0 + $0x8] sm:$0xff]  ;;  %v13_v5 = vld [vmem:[%s547_s0 + $0x10] sm:$0xff] }
   0x2   :  { %v11_v1 = vld [vmem:[%s547_s0] sm:$0xff]  ;;  %372 = vmatprep.subr.mxu0 %v27_v0  ;;  %398 = vmatprep.subr.mxu1 %v27_v0  ;;  %v20_v4 = vld [vmem:[%s547_s0 + $0x48] sm:$0xff]  ;;  %v21_v6 = vld [vmem:[%s547_s0 + $0x50] sm:$0xff] }
   0x3   :  { %v19_v2 = vld [vmem:[%s547_s0 + $0x40] sm:$0xff]  ;;  %373 = vmatpush3.msra.mxu0 %v27_v0  ;;  %399 = vmatpush3.msra.mxu1 %v27_v0  ;;  %v14_v7 = vld [vmem:[%s547_s0 + $0x18] sm:$0xff]  ;;  %v16_v11 = vld [vmem:[%s547_s0 + $0x28] sm:$0xff] }
   0x4   :  { %374 = vmatprep.mubr.msk.f32.mxu0 %vm28_vm0, %v11_v1  ;;  %386 = vmatprep.mubr.msk.f32.mxu1 %vm28_vm0, %v19_v2  ;;  %v22_v8 = vld [vmem:[%s547_s0 + $0x58] sm:$0xff]  ;;  %v15_v9 = vld [vmem:[%s547_s0 + $0x20] sm:$0xff]  ;;  %v24_v12 = vld [vmem:[%s547_s0 + $0x68] sm:$0xff] }
   0x5   :  { %375 = vmatmul.mubr.msk.f32.vlgmr.msra.gmra.mxu0 %vm28_vm0, %v12_v3  ;;  %387 = vmatmul.mubr.msk.f32.vlgmr.msra.gmra.mxu1 %vm28_vm0, %v20_v4  ;;  %v23_v10 = vld [vmem:[%s547_s0 + $0x60] sm:$0xff]  ;;  %v17_v13 = vld [vmem:[%s547_s0 + $0x30] sm:$0xff]  ;;  %v18_v15 = vld [vmem:[%s547_s0 + $0x38] sm:$0xff] }
   0x6   :  { %377 = vmatprep.mubr.msk.f32.mxu0 %vm28_vm0, %v13_v5  ;;  %389 = vmatprep.mubr.msk.f32.mxu1 %vm28_vm0, %v21_v6  ;;  %v25_v14 = vld [vmem:[%s547_s0 + $0x70] sm:$0xff]  ;;  %v26_v16 = vld [vmem:[%s547_s0 + $0x78] sm:$0xff] }
   0x9   :  { %378 = vmatmul.mubr.msk.f32.gmra.mxu0 %vm28_vm0, %v14_v7  ;;  %390 = vmatmul.mubr.msk.f32.gmra.mxu1 %vm28_vm0, %v22_v8 }
   0xa   :  { %380 = vmatprep.mubr.msk.f32.mxu0 %vm28_vm0, %v15_v9  ;;  %392 = vmatprep.mubr.msk.f32.mxu1 %vm28_vm0, %v23_v10 }
   0xd   :  { %381 = vmatmul.mubr.msk.f32.gmra.mxu0 %vm28_vm0, %v16_v11  ;;  %393 = vmatmul.mubr.msk.f32.gmra.mxu1 %vm28_vm0, %v24_v12 }
   0xe   :  { %383 = vmatprep.mubr.msk.f32.mxu0 %vm28_vm0, %v17_v13  ;;  %395 = vmatprep.mubr.msk.f32.mxu1 %vm28_vm0, %v25_v14 }
  0x11   :  { %384 = vmatmul.mubr.msk.f32.gmra.mxu0 %vm28_vm0, %v18_v15  ;;  %396 = vmatmul.mubr.msk.f32.gmra.mxu1 %vm28_vm0, %v26_v16 }
  0xc5   :  { %v376_v17 = vpop.f32.mrf.mxu0  ;;  %v388_v18 = vpop.f32.mrf.mxu1 }
  0xc6   :  { %v340_v19 = vpack.c.bf16 %v376_v17, %v376_v17  ;;  %v348_v20 = vpack.c.bf16 %v388_v18, %v388_v18 }
  0xc7   :  { %v143_v21 = vpop.f32.mrf.mxu0  ;;  %v183_v22 = vpop.f32.mrf.mxu1 }
  0xc8   :  { %288 = vst.msk [vmem:[%s548_s2 + $0x4] sm:$0xf] %vm286_vm1, %v340_v19  ;;  %296 = vst.msk [vmem:[%s548_s2 + $0x24] sm:$0xf] %vm286_vm1, %v348_v20  ;;  %v339_v23 = vpack.c.bf16 %v143_v21, %v143_v21  ;;  %v347_v24 = vpack.c.bf16 %v183_v22, %v183_v22 }
  0xc9   :  { %v379_v25 = vpop.f32.mrf.mxu0  ;;  %v391_v26 = vpop.f32.mrf.mxu1 }
  0xca   :  { %287 = vst.msk [vmem:[%s548_s2] sm:$0xf] %vm286_vm1, %v339_v23  ;;  %295 = vst.msk [vmem:[%s548_s2 + $0x20] sm:$0xf] %vm286_vm1, %v347_v24  ;;  %v342_v27 = vpack.c.bf16 %v379_v25, %v379_v25  ;;  %v350_v28 = vpack.c.bf16 %v391_v26, %v391_v26 }
  0xcb   :  { %v153_v29 = vpop.f32.mrf.mxu0  ;;  %v193_v30 = vpop.f32.mrf.mxu1 }
  0xcc   :  { %290 = vst.msk [vmem:[%s548_s2 + $0xc] sm:$0xf] %vm286_vm1, %v342_v27  ;;  %298 = vst.msk [vmem:[%s548_s2 + $0x2c] sm:$0xf] %vm286_vm1, %v350_v28  ;;  %v341_v31 = vpack.c.bf16 %v153_v29, %v153_v29  ;;  %v349_v32 = vpack.c.bf16 %v193_v30, %v193_v30 }
  0xcd   :  { %v382_v33 = vpop.f32.mrf.mxu0  ;;  %v394_v34 = vpop.f32.mrf.mxu1 }
  0xce   :  { %289 = vst.msk [vmem:[%s548_s2 + $0x8] sm:$0xf] %vm286_vm1, %v341_v31  ;;  %297 = vst.msk [vmem:[%s548_s2 + $0x28] sm:$0xf] %vm286_vm1, %v349_v32  ;;  %v344_v35 = vpack.c.bf16 %v382_v33, %v382_v33  ;;  %v352_v36 = vpack.c.bf16 %v394_v34, %v394_v34 }
  0xcf   :  { %v163_v37 = vpop.f32.mrf.mxu0  ;;  %v203_v38 = vpop.f32.mrf.mxu1 }
  0xd0   :  { %292 = vst.msk [vmem:[%s548_s2 + $0x14] sm:$0xf] %vm286_vm1, %v344_v35  ;;  %300 = vst.msk [vmem:[%s548_s2 + $0x34] sm:$0xf] %vm286_vm1, %v352_v36  ;;  %v343_v39 = vpack.c.bf16 %v163_v37, %v163_v37  ;;  %v351_v40 = vpack.c.bf16 %v203_v38, %v203_v38 }
  0xd1   :  { %v385_v41 = vpop.f32.mrf.mxu0  ;;  %v397_v42 = vpop.f32.mrf.mxu1 }
  0xd2   :  { %291 = vst.msk [vmem:[%s548_s2 + $0x10] sm:$0xf] %vm286_vm1, %v343_v39  ;;  %299 = vst.msk [vmem:[%s548_s2 + $0x30] sm:$0xf] %vm286_vm1, %v351_v40  ;;  %v346_v43 = vpack.c.bf16 %v385_v41, %v385_v41  ;;  %v354_v44 = vpack.c.bf16 %v397_v42, %v397_v42 }
  0xd3   :  { %v173_v45 = vpop.f32.mrf.mxu0  ;;  %v213_v46 = vpop.f32.mrf.mxu1 }
  0xd4   :  { %294 = vst.msk [vmem:[%s548_s2 + $0x1c] sm:$0xf] %vm286_vm1, %v346_v43  ;;  %302 = vst.msk [vmem:[%s548_s2 + $0x3c] sm:$0xf] %vm286_vm1, %v354_v44  ;;  %v345_v47 = vpack.c.bf16 %v173_v45, %v173_v45  ;;  %v353_v48 = vpack.c.bf16 %v213_v46, %v213_v46 }
  0xd6   :  { %293 = vst.msk [vmem:[%s548_s2 + $0x18] sm:$0xf] %vm286_vm1, %v345_v47  ;;  %301 = vst.msk [vmem:[%s548_s2 + $0x38] sm:$0xf] %vm286_vm1, %v353_v48 }

</bundles_post_ra>
